<compile_context>
chip_gen: v7x
topology: tpu7x:2x2x1
jax: 0.10.0
libtpu: 0.0.40
codegen_flags: <defaults>
</compile_context>

<pallas_src>
import functools

import jax
import jax.numpy as jnp
from jax.experimental import pallas as pl
from jax.experimental.pallas import tpu as pltpu


def speakernet_kernel(x_ref, w1_ref, b1_ref, w2_ref, b2_ref, o_ref, acc_ref,
                      *, inv_t):
    t = pl.program_id(1)

    @pl.when(t == 0)
    def _init():
        acc_ref[...] = jnp.zeros_like(acc_ref)

    # Running temporal sum for this batch tile, accumulated in f32 ([tB, F]).
    acc_ref[...] += jnp.sum(x_ref[...].astype(jnp.float32), axis=1)

    @pl.when(t == pl.num_programs(1) - 1)
    def _finalize():
        pooled = acc_ref[...] * inv_t  # mean = sum * (1/T), f32

        # Linear(F -> H) + bias + ReLU: bf16 MXU operands, f32 accumulate, f32 epilogue.
        h = jnp.dot(pooled.astype(jnp.bfloat16), w1_ref[...],
                    preferred_element_type=jnp.float32)
        h = jnp.maximum(h + b1_ref[...], 0.0)

        # Linear(H -> E) + bias.
        e = jnp.dot(h.astype(jnp.bfloat16), w2_ref[...],
                    preferred_element_type=jnp.float32)
        e = e + b2_ref[...]

        o_ref[...] = e.astype(o_ref.dtype)


def speakernet_forward(x, w1, b1, w2, b2, *, block_b=8, block_t=8):
    """Fused inner-module forward, pipelined over (batch, time) tiles."""
    B, T, F = x.shape
    H = w1.shape[1]
    E = w2.shape[1]

    block_b = min(block_b, B)
    block_t = min(block_t, T)
    assert B % block_b == 0 and T % block_t == 0, "demo wrapper assumes divisible tiles"

    grid = (B // block_b, T // block_t)
    kernel = functools.partial(speakernet_kernel, inv_t=1.0 / T)

    # Advisory cost hint so XLA schedules around the custom call sensibly.
    flops = B * T * F + 2 * B * F * H + 2 * B * H * E
    bytes_accessed = (x.size * x.dtype.itemsize
                      + w1.size * w1.dtype.itemsize + w2.size * w2.dtype.itemsize
                      + b1.size * b1.dtype.itemsize + b2.size * b2.dtype.itemsize
                      + B * E * 4)

    return pl.pallas_call(
        kernel,
        out_shape=jax.ShapeDtypeStruct((B, E), jnp.float32),
        grid_spec=pltpu.PrefetchScalarGridSpec(
            num_scalar_prefetch=0,
            grid=grid,
            in_specs=[
                # Dominant x stream: double-buffered per (batch, time) tile.
                pl.BlockSpec((block_b, block_t, F), lambda b, t: (b, t, 0)),
                # Loop-invariant weights & biases: constant index_map -> stay resident.
                pl.BlockSpec((F, H), lambda b, t: (0, 0)),
                pl.BlockSpec((1, H), lambda b, t: (0, 0)),
                pl.BlockSpec((H, E), lambda b, t: (0, 0)),
                pl.BlockSpec((1, E), lambda b, t: (0, 0)),
            ],
            # Output tile is resident across the time (reduction) axis; written on the
            # final time step only.
            out_specs=pl.BlockSpec((block_b, E), lambda b, t: (b, 0)),
            scratch_shapes=[pltpu.VMEM((block_b, F), jnp.float32)],
        ),
        compiler_params=pltpu.CompilerParams(
            dimension_semantics=("parallel", "arbitrary")),
        cost_estimate=pl.CostEstimate(
            flops=flops, transcendentals=0, bytes_accessed=bytes_accessed),
    )(x, w1, b1, w2, b2)


def wrapped_model_forward(x, params, label=None):
    """WrappedModel.forward(x, label) -> self.module(x, label).
    The wrapper adds no computation; `label` is accepted and ignored by the
    synthetic inner module (as on the SpeakerNet inference path)."""
    del label  # TODO(synk): real wrapped `model` is unspecified; label unused.
    w1, b1, w2, b2 = params
    return speakernet_forward(x, w1, b1, w2, b2)


if __name__ == "__main__":
    # Small but MXU/lane-friendly: batch=16, time=32, feat=128, hidden=128, emb=128.
    B, T, F, H, E = 16, 32, 128, 128, 128

    key = jax.random.PRNGKey(0)
    kx, kw1, kb1, kw2, kb2 = jax.random.split(key, 5)

    # bf16 activations/weights (halved HBM traffic), f32 biases (f32 VPU epilogue).
    x = jax.random.normal(kx, (B, T, F), dtype=jnp.float32).astype(jnp.bfloat16)
    w1 = (jax.random.normal(kw1, (F, H), dtype=jnp.float32) * 0.1).astype(jnp.bfloat16)
    b1 = jax.random.normal(kb1, (1, H), dtype=jnp.float32) * 0.1
    w2 = (jax.random.normal(kw2, (H, E), dtype=jnp.float32) * 0.1).astype(jnp.bfloat16)
    b2 = jax.random.normal(kb2, (1, E), dtype=jnp.float32) * 0.1

    params = (w1, b1, w2, b2)

    out = jax.block_until_ready(wrapped_model_forward(x, params, label=None))

    # Reference in plain JAX with identical numerics (bf16 matmul operands, f32 acc).
    pooled = jnp.mean(x.astype(jnp.float32), axis=1)
    h_ref = jnp.maximum(
        jnp.dot(pooled.astype(jnp.bfloat16), w1,
                preferred_element_type=jnp.float32) + b1, 0.0)
    ref = jnp.dot(h_ref.astype(jnp.bfloat16), w2,
                  preferred_element_type=jnp.float32) + b2

    assert out.shape == (B, E)
    assert jnp.allclose(out, ref, atol=1e-2, rtol=1e-2), \
        float(jnp.max(jnp.abs(out - ref)))

    print("KERNEL_OK")
</pallas_src>

<mosaic_0001>
module attributes {stable_mosaic.version = 11 : i64} {
  func.func @speakernet_kernel(%arg0: i32, %arg1: i32, %arg2: memref<8x8x128xbf16, #tpu.memory_space<vmem>>, %arg3: memref<128x128xbf16, #tpu.memory_space<vmem>>, %arg4: memref<1x128xf32, #tpu.memory_space<vmem>>, %arg5: memref<128x128xbf16, #tpu.memory_space<vmem>>, %arg6: memref<1x128xf32, #tpu.memory_space<vmem>>, %arg7: memref<8x128xf32, #tpu.memory_space<vmem>>, %arg8: memref<8x128xf32, #tpu.memory_space<vmem>>) attributes {dimension_semantics = [#tpu.dimension_semantics<parallel>, #tpu.dimension_semantics<arbitrary>], iteration_bounds = array<i64: 2, 4>, scalar_prefetch = 0 : i64, scratch_operands = 1 : i64, tpu.core_type = #tpu.core_type<tc>, window_params = [{transform_indices = @transform_0, window_bounds = array<i64: 8, 8, 128>}, {pipeline_mode = #tpu.pipeline_mode<synchronous>, transform_indices = @transform_1, window_bounds = array<i64: 128, 128>}, {pipeline_mode = #tpu.pipeline_mode<synchronous>, transform_indices = @transform_2, window_bounds = array<i64: 1, 128>}, {pipeline_mode = #tpu.pipeline_mode<synchronous>, transform_indices = @transform_3, window_bounds = array<i64: 128, 128>}, {pipeline_mode = #tpu.pipeline_mode<synchronous>, transform_indices = @transform_4, window_bounds = array<i64: 1, 128>}, {transform_indices = @transform_5, window_bounds = array<i64: 8, 128>}]} {
    %c0_i32 = arith.constant 0 : i32
    %0 = arith.cmpi eq, %arg1, %c0_i32 : i32
    %1 = arith.extui %0 : i1 to i32
    %c0_i32_0 = arith.constant 0 : i32
    %2 = arith.cmpi ne, %1, %c0_i32_0 : i32
    scf.if %2 {
      %cst_8 = arith.constant 0.000000e+00 : f32
      %12 = vector.broadcast %cst_8 : f32 to vector<8x128xf32>
      %c0_9 = arith.constant 0 : index
      %c0_10 = arith.constant 0 : index
      %13 = vector.load %arg8[%c0_9, %c0_10] : memref<8x128xf32, #tpu.memory_space<vmem>>, vector<8x128xf32>
      tpu.vector_store %arg8[%c0_9, %c0_10], %12 {strides = array<i32>} : memref<8x128xf32, #tpu.memory_space<vmem>>, vector<8x128xf32>,
    } else {
    }
    %c0 = arith.constant 0 : index
    %c0_1 = arith.constant 0 : index
    %3 = vector.load %arg8[%c0, %c0_1] : memref<8x128xf32, #tpu.memory_space<vmem>>, vector<8x128xf32>
    %c0_2 = arith.constant 0 : index
    %c0_3 = arith.constant 0 : index
    %c0_4 = arith.constant 0 : index
    %4 = vector.load %arg2[%c0_2, %c0_3, %c0_4] : memref<8x8x128xbf16, #tpu.memory_space<vmem>>, vector<8x8x128xbf16>
    %5 = arith.extf %4 : vector<8x8x128xbf16> to vector<8x8x128xf32>
    %cst = arith.constant dense<0.000000e+00> : vector<8x128xf32>
    %6 = vector.multi_reduction <add>, %5, %cst [1] : vector<8x8x128xf32> to vector<8x128xf32>
    %7 = arith.addf %3, %6 : vector<8x128xf32>
    %c0_5 = arith.constant 0 : index
    %c0_6 = arith.constant 0 : index
    %8 = vector.load %arg8[%c0_5, %c0_6] : memref<8x128xf32, #tpu.memory_space<vmem>>, vector<8x128xf32>
    tpu.vector_store %arg8[%c0_5, %c0_6], %7 {strides = array<i32>} : memref<8x128xf32, #tpu.memory_space<vmem>>, vector<8x128xf32>,
    %c3_i32 = arith.constant 3 : i32
    %9 = arith.cmpi eq, %arg1, %c3_i32 : i32
    %10 = arith.extui %9 : i1 to i32
    %c0_i32_7 = arith.constant 0 : i32
    %11 = arith.cmpi ne, %10, %c0_i32_7 : i32
    scf.if %11 {
      %c0_8 = arith.constant 0 : index
      %c0_9 = arith.constant 0 : index
      %12 = vector.load %arg8[%c0_8, %c0_9] : memref<8x128xf32, #tpu.memory_space<vmem>>, vector<8x128xf32>
      %cst_10 = arith.constant 3.125000e-02 : f32
      %13 = vector.broadcast %cst_10 : f32 to vector<8x128xf32>
      %14 = arith.mulf %12, %13 : vector<8x128xf32>
      %15 = arith.truncf %14 : vector<8x128xf32> to vector<8x128xbf16>
      %c0_11 = arith.constant 0 : index
      %c0_12 = arith.constant 0 : index
      %16 = vector.load %arg3[%c0_11, %c0_12] : memref<128x128xbf16, #tpu.memory_space<vmem>>, vector<128x128xbf16>
      %cst_13 = arith.constant dense<0.000000e+00> : vector<8x128xf32>
      %17 = tpu.matmul %15, %16, %cst_13 {dimension_numbers = #tpu.dot_dimension_numbers<[1], [0], [0], [1], [0, 0, 1, 1], [], []>} : vector<8x128xbf16>, vector<128x128xbf16>, vector<8x128xf32> -> vector<8x128xf32>
      %c0_14 = arith.constant 0 : index
      %c0_15 = arith.constant 0 : index
      %18 = vector.load %arg4[%c0_14, %c0_15] : memref<1x128xf32, #tpu.memory_space<vmem>>, vector<1x128xf32>
      %19 = vector.broadcast %18 : vector<1x128xf32> to vector<8x128xf32>
      %20 = arith.addf %17, %19 : vector<8x128xf32>
      %cst_16 = arith.constant 0.000000e+00 : f32
      %21 = vector.broadcast %cst_16 : f32 to vector<8x128xf32>
      %22 = arith.maximumf %20, %21 : vector<8x128xf32>
      %23 = arith.truncf %22 : vector<8x128xf32> to vector<8x128xbf16>
      %c0_17 = arith.constant 0 : index
      %c0_18 = arith.constant 0 : index
      %24 = vector.load %arg5[%c0_17, %c0_18] : memref<128x128xbf16, #tpu.memory_space<vmem>>, vector<128x128xbf16>
      %cst_19 = arith.constant dense<0.000000e+00> : vector<8x128xf32>
      %25 = tpu.matmul %23, %24, %cst_19 {dimension_numbers = #tpu.dot_dimension_numbers<[1], [0], [0], [1], [0, 0, 1, 1], [], []>} : vector<8x128xbf16>, vector<128x128xbf16>, vector<8x128xf32> -> vector<8x128xf32>
      %c0_20 = arith.constant 0 : index
      %c0_21 = arith.constant 0 : index
      %26 = vector.load %arg6[%c0_20, %c0_21] : memref<1x128xf32, #tpu.memory_space<vmem>>, vector<1x128xf32>
      %27 = vector.broadcast %26 : vector<1x128xf32> to vector<8x128xf32>
      %28 = arith.addf %25, %27 : vector<8x128xf32>
      %c0_22 = arith.constant 0 : index
      %c0_23 = arith.constant 0 : index
      %29 = vector.load %arg7[%c0_22, %c0_23] : memref<8x128xf32, #tpu.memory_space<vmem>>, vector<8x128xf32>
      tpu.vector_store %arg7[%c0_22, %c0_23], %28 {strides = array<i32>} : memref<8x128xf32, #tpu.memory_space<vmem>>, vector<8x128xf32>,
    } else {
    }
    return
  }
  func.func @transform_0(%arg0: i32, %arg1: i32) -> (i32, i32, i32) {
    %c0_i32 = arith.constant 0 : i32
    %c0_i32_0 = arith.constant 0 : i32
    return %arg0, %arg1, %c0_i32 : i32, i32, i32
  }
  func.func @transform_1(%arg0: i32, %arg1: i32) -> (i32, i32) {
    %c0_i32 = arith.constant 0 : i32
    %c0_i32_0 = arith.constant 0 : i32
    %c0_i32_1 = arith.constant 0 : i32
    return %c0_i32, %c0_i32_0 : i32, i32
  }
  func.func @transform_2(%arg0: i32, %arg1: i32) -> (i32, i32) {
    %c0_i32 = arith.constant 0 : i32
    %c0_i32_0 = arith.constant 0 : i32
    %c0_i32_1 = arith.constant 0 : i32
    return %c0_i32, %c0_i32_0 : i32, i32
  }
  func.func @transform_3(%arg0: i32, %arg1: i32) -> (i32, i32) {
    %c0_i32 = arith.constant 0 : i32
    %c0_i32_0 = arith.constant 0 : i32
    %c0_i32_1 = arith.constant 0 : i32
    return %c0_i32, %c0_i32_0 : i32, i32
  }
  func.func @transform_4(%arg0: i32, %arg1: i32) -> (i32, i32) {
    %c0_i32 = arith.constant 0 : i32
    %c0_i32_0 = arith.constant 0 : i32
    %c0_i32_1 = arith.constant 0 : i32
    return %c0_i32, %c0_i32_0 : i32, i32
  }
  func.func @transform_5(%arg0: i32, %arg1: i32) -> (i32, i32) {
    %c0_i32 = arith.constant 0 : i32
    %c0_i32_0 = arith.constant 0 : i32
    return %arg0, %c0_i32 : i32, i32
  }
}

</mosaic_0001>

<bundles_post_ra>
// kernel: tpu_custom_call.1
= control target key start
LH: loop header
LB: loop body
LE: loop exit
PB: predicated region body
PF: predicated region fallthrough
CT: control target
= control target key end

     0   :  { %s1573_s0 = inlined_call_operand.hbm [shape: bf16[16,32,128], index: 0, kind: input, shape index: {}]   ;;  %s1574_s1 = inlined_call_operand.hbm [shape: bf16[128,128], index: 1, kind: input, shape index: {}]   ;;  %s1575_s2 = inlined_call_operand.vmem [shape: f32[1,128], index: 2, kind: input, shape index: {}]   ;;  %s1576_s3 = inlined_call_operand.hbm [shape: bf16[128,128], index: 3, kind: input, shape index: {}]   ;;  %s1577_s4 = inlined_call_operand.vmem [shape: f32[1,128], index: 4, kind: input, shape index: {}]   ;;  %s1578_s5 = inlined_call_operand.hbm [shape: f32[16,128], index: 5, kind: output, shape index: {}]  }
   0x1   :  { %1592 = sst [smem:[#allocation17_spill]] %s1574_s1 }
   0x2   :  { %1593 = sst [smem:[#allocation18_spill]] %s1576_s3 }
   0x3   :  { %1594 = sst [smem:[#allocation19_spill]] %s1578_s5 }
   0x4   :  { %10 = vsyncpa [#allocation4], 0 }
   0x5   :  { %12 = vsyncpa [#allocation4 + $0x1], 0 }
   0x6   :  { %13 = vsyncpa [#allocation7], 0 }
   0x7   :  { %14 = vsyncpa [#allocation5], 0 }
   0x8   :  { %16 = vsyncpa [#allocation5 + $0x1], 0  ;;  %s1249_s18 = smov 0   ;;  %s1251_s19 = smov 0  }
   0x9   :  { %s1253_s20 = smov 0   ;;  %s1255_s21 = smov 0  }
   0xa   :  { %s1257_s22 = smov 0   ;;  %s1259_s23 = smov 0  }
   0xb   :  { %s1261_s24 = smov 0   ;;  %s1263_s25 = smov 0  }
   0xc   :  { %s1265_s26 = smov 0   ;;  %s1267_s27 = smov 0  }
   0xd   :  { %s1269_s28 = smov 0  }
   0xe LB: > { %1595 = sst [smem:[#allocation13_spill]] %s1167_s18  ;;  %s733_s29 = sadd.s32 4294967295, %s1207_s28   ;;  %s1207_s28 = sphi %s1269_s28, %s22_s28   ;;  %s1203_s27 = sphi %s1267_s27, %s1631_s27   ;;  %s1199_s26 = sphi %s1265_s26, %s1630_s26   ;;  %s1195_s25 = sphi %s1263_s25, %s1629_s25   ;;  %s1191_s24 = sphi %s1261_s24, %s1628_s24   ;;  %s1187_s23 = sphi %s1259_s23, %s1627_s23   ;;  %s1183_s22 = sphi %s1257_s22, %s1626_s22   ;;  %s1179_s21 = sphi %s1255_s21, %s1625_s21   ;;  %s1175_s20 = sphi %s1253_s20, %s1624_s20   ;;  %s1171_s19 = sphi %s1251_s19, %s1623_s19   ;;  %s1167_s18 = sphi %s1249_s18, %s1622_s18  }
   0xf   : > { %1596 = sst [smem:[#allocation14_spill]] %s1207_s28  ;;  %s734_s30 = sadd.s32 4294967294, %s1207_s28  }
  0x10   : > { %p50_p0 = scmp.ne.s32.totalorder %s1187_s23, %s1183_s22  ;;  %p51_p1 = scmp.eq.s32.totalorder %s1207_s28, 0 }
  0x11   : > { %p56_p2 = scmp.ne.s32.totalorder %s1183_s22, %s1179_s21  ;;  %p1309_p3 = scmp.eq.s32.totalorder %s733_s29, 0 }
  0x12   : > { %p1314_p4 = por %p51_p1, %p50_p0  ;;  %p163_p5 = scmp.ne.s32.totalorder %s1175_s20, %s1171_s19 }
  0x13   : > { %s1597_s7 = scalar_select %p1309_p3, 1, 0 }
  0x14   : > { %p1322_p6 = por %p1309_p3, %p56_p2  ;;  %p164_p7 = scmp.eq.s32.totalorder %s733_s29, 7 }
  0x15   : > { %p169_p8 = scmp.ne.s32.totalorder %s1171_s19, %s1167_s18  ;;  %p170_p9 = scmp.eq.s32.totalorder %s734_s30, 7 }
  0x16   : > { %s1599_s10 = scalar_select %p1322_p6, 1, 0 }
  0x17   : > { %p1328_p10 = por %p164_p7, %p163_p5  ;;  %p735_p11 = scmp.ge.s32.totalorder %s1207_s28, 1 }
  0x18   : > { %p1333_p12 = por %p170_p9, %p169_p8  ;;  %p177_p13 = scmp.lt.s32.totalorder %s1207_s28, 9 }
  0x19   : > { %s1600_s11 = scalar_select %p1328_p10, 1, 0 }
  0x1a   : > { %s1602_s12 = scalar_select %p1333_p12, 1, 0 }
  0x1b   : > { %1601 = sst [smem:[#allocation15_spill]] %s1600_s11  ;;  %p1338_p0 = pnand %p735_p11, %p177_p13 }
  0x1c   : > { %1603 = sst [smem:[#allocation16_spill]] %s1602_s12  ;;  %s1209_s14 = smov [#allocation6]  }
  0x1d   : > { %s189_s15 = sshll.u32 %s1209_s14, 4  ;;  %p862_p1 = pneg %p1338_p0  ;;  %s1342_s15 = int_to_ptr.vmem [resolvable:$true] %s189_s15 }
  0x1e   : > { %p879_p2 = scmp.lt.s32.totalorder %s1207_s28, 8  ;;  %s1210_s21 = smov [#allocation8]  }
  0x1f   : > { %p1349_p5 = pnand %p862_p1, %p1309_p3  ;;  %s205_s29 = sshll.u32 %s1210_s21, 4  ;;  %s1359_s29 = int_to_ptr.vmem [resolvable:$true] %s205_s29 }
  0x20   : > { %p1355_p7 = pnand %p879_p2, %p1314_p4  ;;  %s1607_s1 = sld [smem:[#allocation17_spill]] }
  0x21   : > { %p997_p9 = pneg %p1349_p5 }
  0x26   : > { %s995_s6 = scalar_lea.hbm %s1607_s1, 1024 }
  0x27   : > { %p996_p8 = scmp.ne.s32.totalorder %s1607_s1, %s995_s6  ;;  %p1002_p13 = scmp.lt.u32.totalorder %s995_s6, %s1607_s1 }
  0x29   : > { %p998_p4 = pnand %p997_p9, %p996_p8 }
  0x2b   : > { %p999_p11 = pneg %p998_p4 }
  0x2d   : > { %p1004_p1 = pnand %p1002_p13, %p999_p11 }
  0x2f   : > { %1007 = shalt.err (!%p1004_p1)
}
  0x30   : > { %s1008_s21 = scalar_lea.vmem %s1342_s15, 1024  ;;  %p1016_p3 = scmp.lt.s32.totalorder %s1342_s15, %s1342_s15 }
  0x31   : > { %p1009_p2 = scmp.ne.s32.totalorder %s1342_s15, %s1008_s21  ;;  %p1017_p8 = scmp.lt.s32.totalorder %s1008_s21, %s1008_s21 }
  0x33   : > { %p1011_p12 = pnand %p1009_p2, %p997_p9  ;;  %p1018_p4 = por %p1017_p8, %p1016_p3 }
  0x35   : > { %p1012_p10 = pneg %p1011_p12 }
  0x37   : > { %p1019_p6 = pnand %p1018_p4, %p1012_p10 }
  0x39   : > { %1022 = shalt.err (!%p1019_p6)
}
  0x3a   : > { %s1590_s18 = smov 64   ;;  %s1591_s6 = smov 4  }
  0x3b   : > { %865 = dma.hbm_to_vmem [thread:$0]  (!%p1349_p5), %s1607_s1, 1024, %s1342_s15, [#allocation7], %s1590_s18, %s1590_s18, %s1591_s6  }
  0x3c   : > { %s1608_s3 = sld [smem:[#allocation18_spill]] }
  0x42   : > { %s1023_s9 = scalar_lea.hbm %s1608_s3, 1024 }
  0x43   : > { %p1024_p3 = scmp.ne.s32.totalorder %s1608_s3, %s1023_s9  ;;  %p1030_p12 = scmp.lt.u32.totalorder %s1023_s9, %s1608_s3 }
  0x45   : > { %p1026_p6 = pnand %p1024_p3, %p997_p9 }
  0x47   : > { %p1027_p10 = pneg %p1026_p6 }
  0x49   : > { %p1032_p11 = pnand %p1030_p12, %p1027_p10 }
  0x4b   : > { %1035 = shalt.err (!%p1032_p11)
}
  0x4c   : > { %s1036_s15 = scalar_lea.vmem %s1359_s29, 1024  ;;  %p1044_p8 = scmp.lt.s32.totalorder %s1359_s29, %s1359_s29 }
  0x4d   : > { %p1037_p13 = scmp.ne.s32.totalorder %s1359_s29, %s1036_s15  ;;  %p1045_p4 = scmp.lt.s32.totalorder %s1036_s15, %s1036_s15 }
  0x4f   : > { %p1039_p1 = pnand %p1037_p13, %p997_p9  ;;  %p1046_p3 = por %p1045_p4, %p1044_p8 }
  0x51   : > { %p1040_p2 = pneg %p1039_p1 }
  0x53   : > { %p1047_p6 = pnand %p1046_p3, %p1040_p2 }
  0x55   : > { %1050 = shalt.err (!%p1047_p6)
}
  0x56   : > { %868 = dma.hbm_to_vmem [thread:$0]  (!%p1349_p5), %s1608_s3, 1024, %s1359_s29, [#allocation7], %s1590_s18, %s1590_s18, %s1591_s6  }
  0x57   : > { %s31_s11 = sadd.s32 1, %s1199_s26  ;;  %s34_s8 = sadd.s32 1, %s1203_s27 }
  0x58   : > { %p32_p9 = scmp.ge.s32.totalorder %s31_s11, 4  ;;  %s222_s16 = sand.u32 1, %s1187_s23  }
  0x59   : > { %s772_s12 = sshll.u32 %s1203_s27, 5  ;;  %s739_s14 = sshll.u32 %s222_s16, 5 }
  0x5a   : > { %s1633_s11 = smov (%p32_p9, %s31_s11), 0  ;;  %s1635_s8 = smov (!%p32_p9, %s34_s8), %s1203_s27 }
  0x5b   : > { %s39_s30 = ssub.s32 %s1199_s26, %s1633_s11  ;;  %p36_p10 = scmp.ge.s32.totalorder %s1635_s8, 2 }
  0x5c   : > { %s232_s9 = sadd.s32 %s1199_s26, %s772_s12  ;;  %s226_s21 = scalar_lea.vmem [#allocation3], %s739_s14 }
  0x5d   : > { %s1637_s8 = smov (%p36_p10, %s1635_s8), 0  ;;  %s742_s29 = sshll.u32 %s232_s9, 6 }
  0x5e   : > { %s235_s15 = sshll.u32 %s226_s21, 4  ;;  %s38_s5 = ssub.s32 %s1203_s27, %s1637_s8  ;;  %s1438_s15 = int_to_ptr.vmem [resolvable:$true] %s235_s15 }
  0x5f   : > { %s1436_s6 = scalar_lea.hbm %s1573_s0, %s742_s29  ;;  %s40_s1 = sor.u32 %s39_s30, %s38_s5 }
  0x60   : > { %p151_p5 = scmp.eq.s32.totalorder %s38_s5, 0  ;;  %p41_p12 = scmp.eq.s32.totalorder %s40_s1, 0 }
  0x61   : > { %s1609_s12 = sadd.s32 1, %s1175_s20  ;;  %s1610_s14 = sadd.s32 1, %s1187_s23 }
  0x62   : > { %s1443_s3 = scalar_select %p151_p5, %s1175_s20, %s1609_s12  }
  0x63   : > { %s1448_s9 = scalar_select %p41_p12, %s1187_s23, %s1610_s14  }
  0x64   : > { %s1450_s21 = scalar_lea.sflag [#allocation4], %s222_s16  ;;  %s1051_s18 = scalar_lea.hbm %s1436_s6, 512 }
  0x65   : > { %p1052_p11 = scmp.ne.s32.totalorder %s1436_s6, %s1051_s18  ;;  %p1053_p13 = pneg %p1355_p7 }
  0x66   : > { %s1056_s29 = scalar_lea.hbm %s1573_s0, 4096  ;;  %p1057_p8 = scmp.lt.u32.totalorder %s1436_s6, %s1573_s0 }
  0x67   : > { %p1054_p1 = pnand %p1053_p13, %p1052_p11  ;;  %p1058_p4 = scmp.lt.u32.totalorder %s1056_s29, %s1051_s18 }
  0x68   : > { %p1060_p6 = scmp.lt.u32.totalorder %s1051_s18, %s1436_s6 }
  0x69   : > { %p1055_p2 = pneg %p1054_p1  ;;  %p1059_p3 = por %p1058_p4, %p1057_p8 }
  0x6b   : > { %p1061_p9 = por %p1060_p6, %p1059_p3 }
  0x6d   : > { %p1062_p10 = pnand %p1061_p9, %p1055_p2 }
  0x6f   : > { %1065 = shalt.err (!%p1062_p10)
}
  0x70   : > { %s1066_s16 = scalar_lea.vmem %s1438_s15, 512  ;;  %s1213_s12 = smov [#allocation3]  }
  0x71   : > { %p1067_p5 = scmp.ne.s32.totalorder %s1438_s15, %s1066_s16  ;;  %s1071_s14 = sshll.u32 %s1213_s12, 4  ;;  %s1072_s14 = int_to_ptr.vmem [resolvable:$false] %s1071_s14 }
  0x72   : > { %s1073_s30 = scalar_lea.vmem %s1072_s14, 1024  ;;  %p1074_p1 = scmp.lt.s32.totalorder %s1438_s15, %s1072_s14 }
  0x73   : > { %p1069_p12 = pnand %p1067_p5, %p1053_p13  ;;  %p1075_p8 = scmp.lt.s32.totalorder %s1073_s30, %s1066_s16 }
  0x75   : > { %p1070_p11 = pneg %p1069_p12  ;;  %p1076_p4 = por %p1075_p8, %p1074_p1 }
  0x77   : > { %p1077_p3 = pnand %p1076_p4, %p1070_p11 }
  0x79   : > { %1080 = shalt.err (!%p1077_p3)
}
  0x7a   : > { %s1214_s18 = smov 256   ;;  %s1611_s1 = smov 4  }
  0x7b   : > { %s1612_s29 = smov 64   ;;  %247 = sbr.rel (%p1338_p0) target bundleno = 652 (0x28c), region = 40 }
  0x7c   : > { %872 = dma.hbm_to_vmem [thread:$0]  (!%p1355_p7), %s1436_s6, 512, %s1438_s15, %s1450_s21, %s1214_s18, %s1612_s29, %s1611_s1  }
  0x7d   : > { %s249_s5 = sand.u32 (!%p1338_p0), 1, %s1183_s22   ;;  %p1613_p13 = scmp.ne.s32.totalorder (!%p1338_p0), %s1599_s10, 0 }
  0x7e   : > { %s744_s28 = sshll.u32 (!%p1338_p0), %s249_s5, 5  ;;  %s250_s16 = scalar_lea.sflag (!%p1338_p0), [#allocation4], %s249_s5 }
  0x7f   : > { %s253_s12 = scalar_lea.vmem (!%p1338_p0), [#allocation3], %s744_s28 }
  0x82   : > { %1154 = dma.done.wait (%p1613_p13), %s250_s16, 512  }
  0x83   : > { %1156 = vsyncadd (%p1613_p13), %s250_s16, 4294966784  ;;  %p1614_p2 = scmp.ne.s32.totalorder %s1597_s7, 0 }
  0x85   : > { %1158 = dma.done.wait (%p1614_p2), [#allocation7], 2048  }
  0x86   : > { %1160 = vsyncadd (%p1614_p2), [#allocation7], 4294965248  ;;  %s285_s13 = sand.u32 1, %s1171_s19   ;;  %p748_p0 = scmp.ne.s32.totalorder %s1191_s24, 0 }
  0x87   : > { %s1494_s17 = sshll.u32 %s285_s13, 3  ;;  %v1215_v0 = vmov (!%p748_p0), 0.0  }
  0x88   : > { %s287_s6 = scalar_lea.vmem [#allocation9], %s1494_s17  ;;  %293 = sbr.rel (%p748_p0) target bundleno = 143 (0x8f), region = 56  ;;  %294 = vst [vmem:[#allocation2] sm:$0xff] (!%p748_p0), %v1215_v0 }
  0x8f PF: > { %v774_v1 = vld [vmem:[%s253_s12] sm:$0xff]   ;;  %v789_v2 = vld [vmem:[%s253_s12 + $0x8] sm:$0xff]   ;;  %v790_v7 = vld [vmem:[%s253_s12 + $0x10] sm:$0xff]   ;;  %vm368_vm0 = vcmask 1041409   ;;  %vm370_vm1 = vcmask 1042434   ;;  %vm372_vm2 = vcmask 1043459  }
  0x90   : > { %v775_v3 = vunpack.c.l.bf16 %v774_v1  ;;  %v776_v4 = vunpack.c.h.bf16 %v774_v1  ;;  %v779_v5 = vunpack.c.l.bf16 %v789_v2  ;;  %v780_v6 = vunpack.c.h.bf16 %v789_v2  ;;  %v791_v8 = vld [vmem:[%s253_s12 + $0x18] sm:$0xff]   ;;  %p749_p7 = scmp.ne.s32.totalorder %s1191_s24, 3 }
  0x91   : > { %v783_v9 = vunpack.c.l.bf16 %v790_v7  ;;  %v784_v10 = vunpack.c.h.bf16 %v790_v7  ;;  %v787_v11 = vunpack.c.l.bf16 %v791_v8  ;;  %v788_v12 = vunpack.c.h.bf16 %v791_v8  ;;  %v295_v1 = vld [vmem:[#allocation2] sm:$0xff]  ;;  %v980_v8 = vld [vmem:[#allocation6 + $0x8] sm:$0xff] (!%p749_p7)  }
  0x92   : > { %v312_v13 = vrot.slane %v775_v3, 4  ;;  %v318_v14 = vrot.slane %v776_v4, 4  ;;  %v324_v15 = vrot.slane %v779_v5, 4  ;;  %v330_v16 = vrot.slane %v780_v6, 4 }
  0x93   : > { %v336_v17 = vrot.slane %v783_v9, 4  ;;  %v342_v18 = vrot.slane %v784_v10, 4  ;;  %v348_v19 = vrot.slane %v787_v11, 4  ;;  %v354_v20 = vrot.slane %v788_v12, 4 }
  0x94   : > { %v313_v21 = vadd.f32 %v775_v3, %v312_v13  ;;  %v319_v22 = vadd.f32 %v776_v4, %v318_v14  ;;  %v325_v23 = vadd.f32 %v779_v5, %v324_v15  ;;  %v331_v24 = vadd.f32 %v780_v6, %v330_v16  ;;  %v979_v6 = vld [vmem:[#allocation6] sm:$0xff] (!%p749_p7)   ;;  %v989_v14 = vld [vmem:[#allocation8 + $0x10] sm:$0xff] (!%p749_p7)   ;;  %v984_v15 = vld [vmem:[#allocation6 + $0x28] sm:$0xff] (!%p749_p7)  }
  0x95   : > { %v337_v25 = vadd.f32 %v783_v9, %v336_v17  ;;  %v343_v26 = vadd.f32 %v784_v10, %v342_v18  ;;  %v349_v27 = vadd.f32 %v787_v11, %v348_v19  ;;  %v355_v28 = vadd.f32 %v788_v12, %v354_v20  ;;  %v981_v9 = vld [vmem:[#allocation6 + $0x10] sm:$0xff] (!%p749_p7)   ;;  %v987_v10 = vld [vmem:[#allocation8] sm:$0xff] (!%p749_p7)   ;;  %v982_v11 = vld [vmem:[#allocation6 + $0x18] sm:$0xff] (!%p749_p7)  }
  0x96   : > { %v314_v29 = vrot.slane %v313_v21, 2  ;;  %v320_v30 = vrot.slane %v319_v22, 2  ;;  %v326_v31 = vrot.slane %v325_v23, 2  ;;  %v332_v32 = vrot.slane %v331_v24, 2  ;;  %v988_v12 = vld [vmem:[#allocation8 + $0x8] sm:$0xff] (!%p749_p7)   ;;  %v983_v13 = vld [vmem:[#allocation6 + $0x20] sm:$0xff] (!%p749_p7)  }
  0x97   : > { %v338_v33 = vrot.slane %v337_v25, 2  ;;  %v344_v34 = vrot.slane %v343_v26, 2  ;;  %v350_v35 = vrot.slane %v349_v27, 2  ;;  %v356_v36 = vrot.slane %v355_v28, 2  ;;  %v990_v16 = vld [vmem:[#allocation8 + $0x18] sm:$0xff] (!%p749_p7)   ;;  %v985_v17 = vld [vmem:[#allocation6 + $0x30] sm:$0xff] (!%p749_p7)  }
  0x98   : > { %v315_v37 = vadd.f32 %v314_v29, %v313_v21  ;;  %v321_v38 = vadd.f32 %v320_v30, %v319_v22  ;;  %v327_v39 = vadd.f32 %v326_v31, %v325_v23  ;;  %v333_v40 = vadd.f32 %v332_v32, %v331_v24  ;;  %v991_v19 = vld [vmem:[#allocation8 + $0x20] sm:$0xff] (!%p749_p7)   ;;  %v986_v21 = vld [vmem:[#allocation6 + $0x38] sm:$0xff] (!%p749_p7)   ;;  %v992_v22 = vld [vmem:[#allocation8 + $0x28] sm:$0xff] (!%p749_p7)  }
  0x99   : > { %v339_v41 = vadd.f32 %v338_v33, %v337_v25  ;;  %v345_v42 = vadd.f32 %v344_v34, %v343_v26  ;;  %v351_v43 = vadd.f32 %v350_v35, %v349_v27  ;;  %v357_v44 = vadd.f32 %v356_v36, %v355_v28  ;;  %v993_v24 = vld [vmem:[#allocation8 + $0x30] sm:$0xff] (!%p749_p7)   ;;  %v994_v25 = vld [vmem:[#allocation8 + $0x38] sm:$0xff] (!%p749_p7)  }
  0x9a   : > { %v316_v45 = vrot.slane %v315_v37, 1  ;;  %v322_v46 = vrot.slane %v321_v38, 1  ;;  %v328_v47 = vrot.slane %v327_v39, 1  ;;  %v334_v48 = vrot.slane %v333_v40, 1  ;;  %v750_v26 = vld [vmem:[%s1575_s2] ss:$0 sm:$0xff] (!%p749_p7) }
  0x9b   : > { %v340_v49 = vrot.slane %v339_v41, 1  ;;  %v346_v50 = vrot.slane %v345_v42, 1  ;;  %v352_v51 = vrot.slane %v351_v43, 1  ;;  %v358_v52 = vrot.slane %v357_v44, 1  ;;  %v759_v34 = vld [vmem:[%s1577_s4] ss:$0 sm:$0xff] (!%p749_p7) }
  0x9c   : > { %v317_v53 = vadd.f32 %v316_v45, %v315_v37  ;;  %v323_v54 = vadd.f32 %v322_v46, %v321_v38  ;;  %v329_v55 = vadd.f32 %v328_v47, %v327_v39  ;;  %v335_v56 = vadd.f32 %v334_v48, %v333_v40 }
  0x9d   : > { %v341_v57 = vadd.f32 %v340_v49, %v339_v41  ;;  %v347_v58 = vadd.f32 %v346_v50, %v345_v42  ;;  %vm374_vm3 = vcmask 1044484   ;;  %v353_v60 = vadd.f32 %v352_v51, %v351_v43 }
  0x9e   : > { %v369_v59 = vsel %vm368_vm0, %v323_v54, %v317_v53  ;;  %vm376_vm4 = vcmask 1045509   ;;  %v359_v62 = vadd.f32 %v358_v52, %v357_v44  ;;  %vm378_vm5 = vcmask 1046534  }
  0x9f   : > { %v371_v61 = vsel %vm370_vm1, %v329_v55, %v369_v59  ;;  %vm380_vm6 = vcmask 1047559   ;;  %v1216_v7 = vmov (!%p749_p7), 0.0   ;;  %vm1217_vm7 = vmmov (!%p749_p7), 0  }
  0xa0   : > { %v373_v63 = vsel %vm372_vm2, %v335_v56, %v371_v61  ;;  %810 = vmatprep.subr.bf16.mxu0 (!%p749_p7), %v1216_v7  ;;  %830 = vmatprep.subr.bf16.mxu1 (!%p749_p7), %v1216_v7 }
  0xa1   : > { %v375_v0 = vsel %vm374_vm3, %v341_v57, %v373_v63  ;;  %388 = sbr.rel (%p749_p7) target bundleno = 625 (0x271), region = 60  ;;  %811 = vmatpush3.bf16.msra.mxu0 (!%p749_p7), %v979_v6  ;;  %826 = vmatprep.mubr.msk.bf16.mxu0 (!%p749_p7), %vm1217_vm7, %v1216_v7 }
  0xa2   : > { %v377_v2 = vsel %vm376_vm4, %v347_v58, %v375_v0  ;;  %812 = vmatprep.subr.bf16.mxu0 (!%p749_p7), %v1216_v7  ;;  %846 = vmatprep.mubr.msk.bf16.mxu1 (!%p749_p7), %vm1217_vm7, %v1216_v7 }
  0xa3   : > { %v379_v3 = vsel %vm378_vm5, %v353_v60, %v377_v2  ;;  %831 = vmatpush3.bf16.msra.mxu1 (!%p749_p7), %v987_v10 }
  0xa4   : > { %v381_v4 = vsel %vm380_vm6, %v359_v62, %v379_v3  ;;  %832 = vmatprep.subr.bf16.mxu1 (!%p749_p7), %v1216_v7 }
  0xa5   : > { %v383_v5 = vadd.f32 %v381_v4, %v295_v1  ;;  %813 = vmatpush3.bf16.msra.mxu0 (!%p749_p7), %v980_v8 }
  0xa6   : > { %814 = vmatprep.subr.bf16.mxu0 (!%p749_p7), %v1216_v7 }
  0xa7   : > { %384 = vst [vmem:[#allocation2] sm:$0xff] %v383_v5  ;;  %833 = vmatpush3.bf16.msra.mxu1 (!%p749_p7), %v988_v12 }
  0xa8   : > { %834 = vmatprep.subr.bf16.mxu1 %v1216_v7 }
  0xa9   : > { %815 = vmatpush3.bf16.msra.mxu0 %v981_v9 }
  0xaa   : > { %816 = vmatprep.subr.bf16.mxu0 %v1216_v7 }
  0xab   : > { %835 = vmatpush3.bf16.msra.mxu1 %v989_v14 }
  0xac   : > { %836 = vmatprep.subr.bf16.mxu1 %v1216_v7 }
  0xad   : > { %817 = vmatpush3.bf16.msra.mxu0 %v982_v11 }
  0xae   : > { %818 = vmatprep.subr.bf16.mxu0 %v1216_v7  ;;  %v389_v18 = vld [vmem:[#allocation2] sm:$0xff] }
  0xaf   : > { %837 = vmatpush3.bf16.msra.mxu1 %v990_v16  ;;  %v390_v20 = vmul.f32 0.03125, %v389_v18 }
  0xb0   : > { %838 = vmatprep.subr.bf16.mxu1 %v1216_v7 }
  0xb1   : > { %819 = vmatpush3.bf16.msra.mxu0 %v983_v13  ;;  %v391_v23 = vpack.c.bf16 %v390_v20, %v390_v20 }
  0xb2   : > { %820 = vmatprep.subr.bf16.mxu0 %v1216_v7 }
  0xb3   : > { %839 = vmatpush3.bf16.msra.mxu1 %v991_v19 }
  0xb4   : > { %840 = vmatprep.subr.bf16.mxu1 %v1216_v7 }
  0xb5   : > { %821 = vmatpush3.bf16.msra.mxu0 %v984_v15 }
  0xb6   : > { %822 = vmatprep.subr.bf16.mxu0 %v1216_v7 }
  0xb7   : > { %841 = vmatpush3.bf16.msra.mxu1 %v992_v22 }
  0xb8   : > { %842 = vmatprep.subr.bf16.mxu1 %v1216_v7 }
  0xb9   : > { %823 = vmatpush3.bf16.msra.mxu0 %v985_v17 }
  0xba   : > { %824 = vmatprep.subr.bf16.mxu0 %v1216_v7 }
  0xbb   : > { %843 = vmatpush3.bf16.msra.mxu1 %v993_v24 }
  0xbc   : > { %844 = vmatprep.subr.bf16.mxu1 %v1216_v7 }
  0xbd   : > { %825 = vmatpush3.bf16.msra.mxu0 %v986_v21 }
  0xbf   : > { %845 = vmatpush3.bf16.msra.mxu1 %v994_v25 }
  0xc0   : > { %827 = vmatmul.mubr.bf16.vlgmr.msra.gmra.mrb[0].mxu0 %v391_v23 }
 0x193   : > { %v497_v27 = vpop.f32.mrb[0].mxu0 }
 0x194   : > { %v498_v28 = vadd.f32 %v750_v26, %v497_v27  ;;  %v828_v29 = vpop.f32.mrb[1].mxu0 }
 0x195   : > { %v500_v30 = vpop.f32.mrb[2].mxu0 }
 0x196   : > { %v503_v31 = vmax.f32 %v498_v28, 0.0  ;;  %v829_v32 = vpop.f32.mrb[3].mxu0 }
 0x198   : > { %v504_v33 = vpack.c.bf16 %v503_v31, %v503_v31 }
 0x19a   : > { %847 = vmatmul.mubr.bf16.vlgmr.msra.gmra.mrb[0].mxu1 %v504_v33 }
 0x26d   : > { %v610_v35 = vpop.f32.mrb[0].mxu1 }
 0x26e   : > { %v611_v36 = vadd.f32 %v759_v34, %v610_v35  ;;  %v848_v37 = vpop.f32.mrb[1].mxu1 }
 0x26f   : > { %v613_v38 = vpop.f32.mrb[2].mxu1 }
 0x270   : > { %616 = vst [vmem:[%s287_s6] sm:$0xff] %v611_v36  ;;  %v849_v39 = vpop.f32.mrb[3].mxu1 }
 0x271 PF: > { %s1615_s21 = sld [smem:[#allocation15_spill]]  ;;  %s769_s14 = sshll.u32 %s1195_s25, 7 }
 0x272   : > { %s1616_s1 = sld [smem:[#allocation19_spill]]  ;;  %s631_s5 = sshll.u32 %s287_s6, 4  ;;  %s632_s5 = int_to_ptr.vmem [resolvable:$true] %s631_s5 }
 0x273   : > { %s618_s28 = scalar_lea.sflag [#allocation5], %s285_s13  ;;  %s1081_s16 = scalar_lea.vmem %s632_s5, 128 }
 0x274   : > { %p1082_p6 = scmp.ne.s32.totalorder %s632_s5, %s1081_s16  ;;  %s1218_s12 = smov [#allocation9]  }
 0x275   : > { %s1085_s24 = sshll.u32 %s1218_s12, 4  ;;  %s1086_s24 = int_to_ptr.vmem [resolvable:$false] %s1085_s24 }
 0x276   : > { %s1087_s7 = scalar_lea.vmem %s1086_s24, 256  ;;  %p1088_p12 = scmp.lt.s32.totalorder %s632_s5, %s1086_s24 }
 0x277   : > { %p1617_p9 = scmp.ne.s32.totalorder %s1615_s21, 0  ;;  %p1089_p11 = scmp.lt.s32.totalorder %s1087_s7, %s1081_s16 }
 0x278   : > { %s1513_s29 = scalar_lea.hbm %s1616_s1, %s769_s14 }
 0x279   : > { %p1083_p10 = pnand %p1082_p6, %p1617_p9  ;;  %p1090_p1 = por %p1089_p11, %p1088_p12 }
 0x27b   : > { %p1084_p5 = pneg %p1083_p10 }
 0x27d   : > { %p1091_p8 = pnand %p1090_p1, %p1084_p5 }
 0x27f   : > { %1094 = shalt.err (!%p1091_p8)
}
 0x280   : > { %s1095_s25 = scalar_lea.hbm %s1513_s29, 128  ;;  %s1099_s6 = scalar_lea.hbm %s1616_s1, 256 }
 0x281   : > { %p1096_p4 = scmp.ne.s32.totalorder %s1513_s29, %s1095_s25  ;;  %p1100_p2 = scmp.lt.u32.totalorder %s1513_s29, %s1616_s1 }
 0x282   : > { %p1101_p0 = scmp.lt.u32.totalorder %s1099_s6, %s1095_s25  ;;  %p1103_p6 = scmp.lt.u32.totalorder %s1095_s25, %s1513_s29 }
 0x283   : > { %p1097_p3 = pnand %p1096_p4, %p1617_p9 }
 0x284   : > { %p1102_p7 = por %p1101_p0, %p1100_p2 }
 0x285   : > { %p1098_p13 = pneg %p1097_p3 }
 0x286   : > { %p1104_p10 = por %p1103_p6, %p1102_p7 }
 0x288   : > { %p1105_p5 = pnand %p1104_p10, %p1098_p13 }
 0x28a   : > { %1108 = shalt.err (!%p1105_p5)
}
 0x28b   : > { %860 = dma.vmem_to_hbm [thread:$0]  (%p1617_p9), %s632_s5, 128, %s1513_s29, %s618_s28  }
 0x28c PF: > { %s1618_s14 = sld [smem:[#allocation14_spill]]  ;;  %s1619_s30 = sld [smem:[#allocation13_spill]] }
 0x28d   : > { %s1620_s18 = sld [smem:[#allocation16_spill]] }
 0x292   : > { %p882_p12 = scmp.ge.s32.totalorder %s1618_s14, 2  ;;  %s643_s16 = sand.u32 1, %s1619_s30  }
 0x293   : > { %p1621_p11 = scmp.ne.s32.totalorder %s1620_s18, 0  ;;  %s644_s12 = scalar_lea.sflag [#allocation5], %s643_s16 }
 0x295   : > { %p874_p1 = pnand %p882_p12, %p1621_p11 }
 0x297   : > { %1162 = dma.done.wait (!%p874_p1), %s644_s12, 128  }
 0x298   : > { %1164 = vsyncadd (!%p874_p1), %s644_s12, 4294967168  ;;  %s22_s28 = sadd.s32 1, %s1618_s14   ;;  %s1622_s18 = smov %s1171_s19 }
 0x299   : > { %p19_p8 = scmp.ge.s32.totalorder %s22_s28, 10   ;;  %s1623_s19 = smov %s1175_s20 }
 0x29a   : > { %s1624_s20 = smov %s1443_s3  ;;  %s1625_s21 = smov %s1183_s22 }
 0x29b   : > { %s1626_s22 = smov %s1187_s23  ;;  %s1627_s23 = smov %s1448_s9 }
 0x29c   : > { %s1628_s24 = smov %s1199_s26  ;;  %s1629_s25 = smov %s1203_s27 }
 0x29d   : > { %s1630_s26 = smov %s1633_s11  ;;  %s1631_s27 = smov %s1637_s8 }
 0x29e   :  { %21 = sbr.rel (!%p19_p8) target bundleno = 14 (0xe), region = 101 }
 0x2a5   :  { %649 = vsyncpa [#allocation4], 1 }
 0x2a6   :  { %651 = vsyncpa [#allocation4 + $0x1], 1 }
 0x2a7   :  { %652 = vsyncpa [#allocation7], 1 }
 0x2a8   :  { %653 = vsyncpa [#allocation5], 1 }
 0x2a9   :  { %655 = vsyncpa [#allocation5 + $0x1], 1 }

</bundles_post_ra>
